<compile_context>
chip_gen: v6e
topology: v6e:2x2x1
jax: 0.10.0
libtpu: 0.0.40
codegen_flags: <defaults>
</compile_context>

<pallas_src>
import jax
import jax.numpy as jnp
from jax.experimental import pallas as pl
from jax.experimental.pallas import tpu as pltpu

# ----------------------------------------------------------------------------
# Config mirroring KLInferenceSGD(K_list, base_models_dict, aggregates, ...)
# ----------------------------------------------------------------------------
AGGREGATES = ("sum", "slope")
K_LIST = (1, 2, 4)
MAX_K = max(K_LIST)

CHUNK_SUB = 8              # sublanes per inner chunk: one (8,128) f32 vreg
SUB_BLOCK_DEFAULT = 128    # sublane groups per grid step (=> 16384 columns)


def _round_up(x, m):
    return ((x + m - 1) // m) * m


def _cdiv(a, b):
    return (a + b - 1) // b


def _get_a_py(agg_type, K):
    """Python-float version of KLInferenceSGD.get_A coefficients (K==1 -> ones)."""
    if agg_type == "sum":
        return [1.0 / K] * K
    elif agg_type == "slope":
        if K == 1:
            return [1.0]
        xs = [float(i) for i in range(K)]
        m_x = sum(xs) / K
        s_xx = sum((x - m_x) ** 2 for x in xs)
        return [(x - m_x) / s_xx for x in xs]
    raise ValueError(agg_type)


def build_row_template_py():
    """Static (M, MAX_K) block-diagonal coefficient template as Python floats.

    Row m of the per-window design matrix A is  T_ROWS[m] / sigma[m]  (exactly
    what torch.block_diag(...) * 1/sigma builds in get_A).  Also returns, per
    row, which (agg, K, block-index) sigma/mu to use.  Baked into the kernel
    as trace-time constants (no T input / no DMA for it).
    """
    rows, row_keys = [], []
    flg1 = False
    for agg in AGGREGATES:
        for K in K_LIST:
            if K == 1 and not flg1:
                use, flg1 = True, True
            elif K > 1:
                use = True
            else:
                use = False
            if not use:
                continue
            a = _get_a_py(agg, K)
            nblk = MAX_K // K
            for r in range(nblk):
                row = [0.0] * MAX_K
                for q in range(K):
                    row[r * K + q] = a[q]
                rows.append(row)
                row_keys.append((agg, K, r))
    return rows, row_keys


T_ROWS, ROW_KEYS = build_row_template_py()
M_ROWS = len(T_ROWS)          # = 10 for the (sum, slope) x (1, 2, 4) config


def get_a(agg_type, K):
    """jnp version (used only by the pure-JAX reference)."""
    return jnp.asarray(_get_a_py(agg_type, K), jnp.float32)


# ----------------------------------------------------------------------------
# Pallas kernel: batched weighted normal-equations solve
# ----------------------------------------------------------------------------
def _recip(x):
    """EUP approx reciprocal + one Newton step (~f32 accuracy).

    NOTE(perf review): approx-only (no NR) on the per-row weights is a ~15-20%
    VALU cut; kept refined here because it could not be tolerance-validated on
    hardware in this iteration.
    """
    r = pl.reciprocal(x, approx=True)
    return r * (2.0 - x * r)


def _scaled(c, v):
    """c * v with trace-time folding of +/-1 coefficients."""
    if c == 1.0:
        return v
    if c == -1.0:
        return -v
    return c * v


def _lstsq_kernel(sigma_ref, mu_ref, x_ref):
    """x = (A^T A)^{-1} A^T b per column, with A = T / sigma (row-wise), b = mu/sigma.

    sigma_ref, mu_ref: (M_ROWS, SUB, 128) VMEM blocks; original column c of the
        (M, B) stacks lives at (group, lane) = (c // 128, c % 128).
    x_ref: (MAX_K, SUB, 128) solution per (batch, window) column.
    """
    n_chunks = sigma_ref.shape[1] // CHUNK_SUB
    K = MAX_K

    @pl.loop(0, n_chunks)
    def _(c):
        off = pl.multiple_of(c * CHUNK_SUB, CHUNK_SUB)
        zero = jnp.zeros((CHUNK_SUB, 128), jnp.float32)

        # --- Gram upper triangle + rhs accumulated row by row (VALU only). --
        # G[i][j] = sum_m T[m,i]*T[m,j]/sigma_m^2 ; rhs[i] = sum_m T[m,i]*mu_m/sigma_m^2
        Gacc = {}                      # (i, j) with i <= j -> (8, 128)
        rhs = [None] * K               # i -> (8, 128)
        for m in range(M_ROWS):
            row = T_ROWS[m]
            s = sigma_ref[m, pl.ds(off, CHUNK_SUB), :]        # (8,128) vld
            mu = mu_ref[m, pl.ds(off, CHUNK_SUB), :]          # (8,128) vld
            wm = _recip(s * s)                                # 1/sigma^2 (EUP + NR)
            mbm = mu * wm                                     # mu/sigma^2
            for i in range(K):
                ti = row[i]
                if ti == 0.0:
                    continue                                  # trace-time sparsity
                t = _scaled(ti, mbm)
                rhs[i] = t if rhs[i] is None else rhs[i] + t
                for j in range(i, K):                         # upper triangle only
                    cij = ti * row[j]
                    if cij == 0.0:
                        continue
                    g = _scaled(cij, wm)
                    Gacc[(i, j)] = g if (i, j) not in Gacc else Gacc[(i, j)] + g
        # Config-robust: fill structural zeros at trace time (no KeyError for
        # templates whose Gram has structural zeros).
        for i in range(K):
            if rhs[i] is None:
                rhs[i] = zero
            for j in range(i, K):
                Gacc.setdefault((i, j), zero)

        # --- Symmetric Gaussian elimination (no pivoting) + back substitution.
        # A^T A is SPD for sigma > 0 and the full-rank block-diagonal template;
        # padded lanes use sigma=1 (SPD) and mu=0, so elimination is well
        # defined everywhere.
        U = dict(Gacc)
        y = list(rhs)
        pinv = [None] * K
        for i in range(K):
            pinv[i] = _recip(U[(i, i)])
            for r in range(i + 1, K):
                f = U[(i, r)] * pinv[i]     # symmetry: reduced U[r,i] == U[i,r]
                for col in range(r, K):
                    U[(r, col)] = U[(r, col)] - f * U[(i, col)]
                y[r] = y[r] - f * y[i]
        xs = [None] * K
        for i in range(K - 1, -1, -1):
            acc = y[i]
            for col in range(i + 1, K):
                acc = acc - U[(i, col)] * xs[col]
            xs[i] = acc * pinv[i]

        # --- Dense, unmasked (8,128) stores of this chunk's solution rows. ---
        for k in range(K):
            x_ref[k, pl.ds(off, CHUNK_SUB), :] = xs[k]


def _choose_tiling(B, sub_block=SUB_BLOCK_DEFAULT):
    """Pick (sublane groups per grid step, total padded sublane groups)."""
    n_grp = max(_cdiv(B, 128), 1)
    n_grp = _round_up(n_grp, CHUNK_SUB)
    sub = _round_up(min(sub_block, n_grp), CHUNK_SUB)
    # Keep the grid length >= 2 when there is more than one chunk of work so
    # both v7x TensorCores get used (no-op on single-TC v5e/v6e).
    if n_grp > CHUNK_SUB and _cdiv(n_grp, sub) < 2:
        sub = max(CHUNK_SUB, _round_up(_cdiv(n_grp, 2), CHUNK_SUB))
    n_grp = _round_up(n_grp, sub)
    return sub, n_grp


def solve_window_lstsq(sigma_stack, mu_stack, *, sub_block=SUB_BLOCK_DEFAULT):
    """sigma_stack, mu_stack: (M, B)  ->  x: (MAX_K, B).

    B (= batch * n_windows) is padded to a whole number of (sub, 128) blocks;
    padded columns get sigma=1, mu=0 so the solve stays well-defined there.
    """
    M, B = sigma_stack.shape
    assert M == M_ROWS
    sub, n_grp = _choose_tiling(B, sub_block)
    b_pad = n_grp * 128
    if b_pad != B:
        pad = b_pad - B
        sigma_stack = jnp.pad(sigma_stack, ((0, 0), (0, pad)), constant_values=1.0)
        mu_stack = jnp.pad(mu_stack, ((0, 0), (0, pad)), constant_values=0.0)

    sigma3 = sigma_stack.reshape(M, n_grp, 128)     # sublane-dense 3D layout
    mu3 = mu_stack.reshape(M, n_grp, 128)

    out = pl.pallas_call(
        _lstsq_kernel,
        out_shape=jax.ShapeDtypeStruct((MAX_K, n_grp, 128), jnp.float32),
        grid=(n_grp // sub,),
        in_specs=[
            pl.BlockSpec((M_ROWS, sub, 128), lambda i: (0, i, 0)),
            pl.BlockSpec((M_ROWS, sub, 128), lambda i: (0, i, 0)),
        ],
        out_specs=pl.BlockSpec((MAX_K, sub, 128), lambda i: (0, i, 0)),
        compiler_params=pltpu.CompilerParams(
            dimension_semantics=("parallel",)),
    )(sigma3, mu3)
    return out.reshape(MAX_K, b_pad)[:, :B]


# ----------------------------------------------------------------------------
# Glue: synthetic params_dict + stacking (stands in for get_params_dict)
# ----------------------------------------------------------------------------
def synthesize_params_dict(key, bs, N):
    """Deterministic stand-in for get_params_dict (the real module runs
    external base models + norm unnormalization).  params[agg][K] =
    [means, stds, d, v] with the 'variance' estimate_type, opt_normspace=True."""
    params = {}
    for agg in AGGREGATES:
        params[agg] = {}
        for K in K_LIST:
            n = N // K
            key, k1, k2 = jax.random.split(key, 3)
            means = jax.random.normal(k1, (bs, n, 1), jnp.float32)
            stds = 0.5 + jax.random.uniform(k2, (bs, n, 1), jnp.float32)
            d = stds ** 2
            v = jnp.ones_like(means) * 1e-9
            params[agg][K] = [means, stds, d, v]
    return params


def build_stacks(params_dict, row_keys, bs, N):
    """Stack per-window (mu, sigma) values in the row order of the template."""
    n_win = N // MAX_K
    sig_rows, mu_rows = [], []
    for (agg, K, r) in row_keys:
        stds = params_dict[agg][K][1][..., 0]   # (bs, N//K)
        mus = params_dict[agg][K][0][..., 0]
        nblk = MAX_K // K
        idx = jnp.arange(n_win) * nblk + r      # per-window block index
        sig_rows.append(stds[:, idx])           # (bs, n_win)
        mu_rows.append(mus[:, idx])
    sigma_stack = jnp.stack(sig_rows, axis=0)   # (M, bs, n_win)
    mu_stack = jnp.stack(mu_rows, axis=0)
    M = sigma_stack.shape[0]
    return (sigma_stack.reshape(M, bs * n_win),
            mu_stack.reshape(M, bs * n_win))


def kl_inference_forward(params_dict, bs, N):
    """Forward of KLInferenceSGD with solve_mean=True, solve_std=False.
    Returns (all_preds_mu, all_preds_d, all_preds_v, all_preds_std)."""
    sigma_stack, mu_stack = build_stacks(params_dict, ROW_KEYS, bs, N)
    n_win = N // MAX_K

    x = solve_window_lstsq(sigma_stack, mu_stack)      # (MAX_K, bs*n_win)
    x = x.reshape(MAX_K, bs, n_win)
    base_lvl_mu = jnp.transpose(x, (1, 2, 0)).reshape(bs, N, 1)

    base = AGGREGATES[0]
    base_lvl_std = params_dict[base][1][1]
    all_preds_d = params_dict[base][1][2]
    all_preds_v = params_dict[base][1][3]
    # TODO(synk): solve_std=True branch (Adam + autograd KL-loss optimization
    # loop with data-dependent stopping) has no clean Pallas equivalent.
    return base_lvl_mu, all_preds_d, all_preds_v, base_lvl_std


# ----------------------------------------------------------------------------
# Pure-JAX reference mirroring solve_base_level_mean exactly
# ----------------------------------------------------------------------------
def reference_solve(params_dict, bs, N):
    xs = []
    for i in range(0, N, MAX_K):
        A_blocks, b_blocks = [], []
        flg = False
        for agg in AGGREGATES:
            for K in K_LIST:
                if K == 1 and flg:
                    continue
                if K == 1:
                    flg = True
                i1 = i // K
                i2 = i1 + MAX_K // K
                sigma = params_dict[agg][K][1][:, i1:i2, :]
                mu = params_dict[agg][K][0][:, i1:i2, :]
                a = get_a(agg, K)
                nblk = MAX_K // K
                rows = jnp.zeros((nblk, MAX_K), jnp.float32)
                for r in range(nblk):
                    rows = rows.at[r, r * K:(r + 1) * K].set(a)
                A_blocks.append(rows[None] / sigma)      # (bs, nblk, MAX_K)
                b_blocks.append(mu / sigma)              # (bs, nblk, 1)
        A = jnp.concatenate(A_blocks, axis=1)
        b = jnp.concatenate(b_blocks, axis=1)
        At = jnp.swapaxes(A, 1, 2)
        x_ = jnp.linalg.inv(At @ A) @ (At @ b)
        xs.append(x_)
    return jnp.concatenate(xs, axis=1)


if __name__ == "__main__":
    bs, N = 2, 16
    params_dict = synthesize_params_dict(jax.random.PRNGKey(0), bs, N)

    mu, d, v, std = kl_inference_forward(params_dict, bs, N)
    jax.block_until_ready((mu, d, v, std))

    assert mu.shape == (bs, N, 1)
    assert std.shape == (bs, N, 1) and d.shape == (bs, N, 1) and v.shape == (bs, N, 1)

    ref_mu = reference_solve(params_dict, bs, N)
    assert jnp.allclose(mu, ref_mu, rtol=1e-2, atol=1e-3), (
        "mismatch", float(jnp.max(jnp.abs(mu - ref_mu))))

    print("KERNEL_OK")
</pallas_src>

<mosaic_0001>
module attributes {stable_mosaic.version = 11 : i64} {
  func.func @_lstsq_kernel(%arg0: i32, %arg1: memref<10x8x128xf32, #tpu.memory_space<vmem>>, %arg2: memref<10x8x128xf32, #tpu.memory_space<vmem>>, %arg3: memref<4x8x128xf32, #tpu.memory_space<vmem>>) attributes {dimension_semantics = [#tpu.dimension_semantics<parallel>], iteration_bounds = array<i64: 1>, scalar_prefetch = 0 : i64, scratch_operands = 0 : i64, tpu.core_type = #tpu.core_type<tc>, window_params = [{transform_indices = @transform_0, window_bounds = array<i64: 10, 8, 128>}, {transform_indices = @transform_1, window_bounds = array<i64: 10, 8, 128>}, {transform_indices = @transform_2, window_bounds = array<i64: 4, 8, 128>}]} {
    %c0_i32 = arith.constant 0 : i32
    %c1_i32 = arith.constant 1 : i32
    %0 = arith.muli %c0_i32, %c1_i32 : i32
    %c0_i32_0 = arith.constant 0 : i32
    %1 = arith.addi %c0_i32_0, %0 : i32
    %c8_i32 = arith.constant 8 : i32
    %2 = arith.muli %1, %c8_i32 : i32
    %3 = tpu.assume_multiple %2, 8 : i32
    %c0 = arith.constant 0 : index
    %4 = arith.index_cast %3 : i32 to index
    %c0_1 = arith.constant 0 : index
    %5 = vector.load %arg1[%c0, %4, %c0_1] : memref<10x8x128xf32, #tpu.memory_space<vmem>>, vector<1x8x128xf32>
    %6 = vector.shape_cast %5 : vector<1x8x128xf32> to vector<8x128xf32>
    %c0_2 = arith.constant 0 : index
    %7 = arith.index_cast %3 : i32 to index
    %c0_3 = arith.constant 0 : index
    %8 = vector.load %arg2[%c0_2, %7, %c0_3] : memref<10x8x128xf32, #tpu.memory_space<vmem>>, vector<1x8x128xf32>
    %9 = vector.shape_cast %8 : vector<1x8x128xf32> to vector<8x128xf32>
    %10 = arith.mulf %6, %6 : vector<8x128xf32>
    %11 = tpu.reciprocal %10 {approx = true} : vector<8x128xf32> -> vector<8x128xf32>
    %12 = arith.mulf %10, %11 : vector<8x128xf32>
    %cst = arith.constant 2.000000e+00 : f32
    %13 = vector.broadcast %cst : f32 to vector<8x128xf32>
    %14 = arith.subf %13, %12 : vector<8x128xf32>
    %15 = arith.mulf %11, %14 : vector<8x128xf32>
    %16 = arith.mulf %9, %15 : vector<8x128xf32>
    %c1 = arith.constant 1 : index
    %17 = arith.index_cast %3 : i32 to index
    %c0_4 = arith.constant 0 : index
    %18 = vector.load %arg1[%c1, %17, %c0_4] : memref<10x8x128xf32, #tpu.memory_space<vmem>>, vector<1x8x128xf32>
    %19 = vector.shape_cast %18 : vector<1x8x128xf32> to vector<8x128xf32>
    %c1_5 = arith.constant 1 : index
    %20 = arith.index_cast %3 : i32 to index
    %c0_6 = arith.constant 0 : index
    %21 = vector.load %arg2[%c1_5, %20, %c0_6] : memref<10x8x128xf32, #tpu.memory_space<vmem>>, vector<1x8x128xf32>
    %22 = vector.shape_cast %21 : vector<1x8x128xf32> to vector<8x128xf32>
    %23 = arith.mulf %19, %19 : vector<8x128xf32>
    %24 = tpu.reciprocal %23 {approx = true} : vector<8x128xf32> -> vector<8x128xf32>
    %25 = arith.mulf %23, %24 : vector<8x128xf32>
    %cst_7 = arith.constant 2.000000e+00 : f32
    %26 = vector.broadcast %cst_7 : f32 to vector<8x128xf32>
    %27 = arith.subf %26, %25 : vector<8x128xf32>
    %28 = arith.mulf %24, %27 : vector<8x128xf32>
    %29 = arith.mulf %22, %28 : vector<8x128xf32>
    %c2 = arith.constant 2 : index
    %30 = arith.index_cast %3 : i32 to index
    %c0_8 = arith.constant 0 : index
    %31 = vector.load %arg1[%c2, %30, %c0_8] : memref<10x8x128xf32, #tpu.memory_space<vmem>>, vector<1x8x128xf32>
    %32 = vector.shape_cast %31 : vector<1x8x128xf32> to vector<8x128xf32>
    %c2_9 = arith.constant 2 : index
    %33 = arith.index_cast %3 : i32 to index
    %c0_10 = arith.constant 0 : index
    %34 = vector.load %arg2[%c2_9, %33, %c0_10] : memref<10x8x128xf32, #tpu.memory_space<vmem>>, vector<1x8x128xf32>
    %35 = vector.shape_cast %34 : vector<1x8x128xf32> to vector<8x128xf32>
    %36 = arith.mulf %32, %32 : vector<8x128xf32>
    %37 = tpu.reciprocal %36 {approx = true} : vector<8x128xf32> -> vector<8x128xf32>
    %38 = arith.mulf %36, %37 : vector<8x128xf32>
    %cst_11 = arith.constant 2.000000e+00 : f32
    %39 = vector.broadcast %cst_11 : f32 to vector<8x128xf32>
    %40 = arith.subf %39, %38 : vector<8x128xf32>
    %41 = arith.mulf %37, %40 : vector<8x128xf32>
    %42 = arith.mulf %35, %41 : vector<8x128xf32>
    %c3 = arith.constant 3 : index
    %43 = arith.index_cast %3 : i32 to index
    %c0_12 = arith.constant 0 : index
    %44 = vector.load %arg1[%c3, %43, %c0_12] : memref<10x8x128xf32, #tpu.memory_space<vmem>>, vector<1x8x128xf32>
    %45 = vector.shape_cast %44 : vector<1x8x128xf32> to vector<8x128xf32>
    %c3_13 = arith.constant 3 : index
    %46 = arith.index_cast %3 : i32 to index
    %c0_14 = arith.constant 0 : index
    %47 = vector.load %arg2[%c3_13, %46, %c0_14] : memref<10x8x128xf32, #tpu.memory_space<vmem>>, vector<1x8x128xf32>
    %48 = vector.shape_cast %47 : vector<1x8x128xf32> to vector<8x128xf32>
    %49 = arith.mulf %45, %45 : vector<8x128xf32>
    %50 = tpu.reciprocal %49 {approx = true} : vector<8x128xf32> -> vector<8x128xf32>
    %51 = arith.mulf %49, %50 : vector<8x128xf32>
    %cst_15 = arith.constant 2.000000e+00 : f32
    %52 = vector.broadcast %cst_15 : f32 to vector<8x128xf32>
    %53 = arith.subf %52, %51 : vector<8x128xf32>
    %54 = arith.mulf %50, %53 : vector<8x128xf32>
    %55 = arith.mulf %48, %54 : vector<8x128xf32>
    %c4 = arith.constant 4 : index
    %56 = arith.index_cast %3 : i32 to index
    %c0_16 = arith.constant 0 : index
    %57 = vector.load %arg1[%c4, %56, %c0_16] : memref<10x8x128xf32, #tpu.memory_space<vmem>>, vector<1x8x128xf32>
    %58 = vector.shape_cast %57 : vector<1x8x128xf32> to vector<8x128xf32>
    %c4_17 = arith.constant 4 : index
    %59 = arith.index_cast %3 : i32 to index
    %c0_18 = arith.constant 0 : index
    %60 = vector.load %arg2[%c4_17, %59, %c0_18] : memref<10x8x128xf32, #tpu.memory_space<vmem>>, vector<1x8x128xf32>
    %61 = vector.shape_cast %60 : vector<1x8x128xf32> to vector<8x128xf32>
    %62 = arith.mulf %58, %58 : vector<8x128xf32>
    %63 = tpu.reciprocal %62 {approx = true} : vector<8x128xf32> -> vector<8x128xf32>
    %64 = arith.mulf %62, %63 : vector<8x128xf32>
    %cst_19 = arith.constant 2.000000e+00 : f32
    %65 = vector.broadcast %cst_19 : f32 to vector<8x128xf32>
    %66 = arith.subf %65, %64 : vector<8x128xf32>
    %67 = arith.mulf %63, %66 : vector<8x128xf32>
    %68 = arith.mulf %61, %67 : vector<8x128xf32>
    %cst_20 = arith.constant 5.000000e-01 : f32
    %69 = vector.broadcast %cst_20 : f32 to vector<8x128xf32>
    %70 = arith.mulf %69, %68 : vector<8x128xf32>
    %71 = arith.addf %16, %70 : vector<8x128xf32>
    %cst_21 = arith.constant 2.500000e-01 : f32
    %72 = vector.broadcast %cst_21 : f32 to vector<8x128xf32>
    %73 = arith.mulf %72, %67 : vector<8x128xf32>
    %74 = arith.addf %15, %73 : vector<8x128xf32>
    %cst_22 = arith.constant 2.500000e-01 : f32
    %75 = vector.broadcast %cst_22 : f32 to vector<8x128xf32>
    %76 = arith.mulf %75, %67 : vector<8x128xf32>
    %cst_23 = arith.constant 5.000000e-01 : f32
    %77 = vector.broadcast %cst_23 : f32 to vector<8x128xf32>
    %78 = arith.mulf %77, %68 : vector<8x128xf32>
    %79 = arith.addf %29, %78 : vector<8x128xf32>
    %cst_24 = arith.constant 2.500000e-01 : f32
    %80 = vector.broadcast %cst_24 : f32 to vector<8x128xf32>
    %81 = arith.mulf %80, %67 : vector<8x128xf32>
    %82 = arith.addf %28, %81 : vector<8x128xf32>
    %c5 = arith.constant 5 : index
    %83 = arith.index_cast %3 : i32 to index
    %c0_25 = arith.constant 0 : index
    %84 = vector.load %arg1[%c5, %83, %c0_25] : memref<10x8x128xf32, #tpu.memory_space<vmem>>, vector<1x8x128xf32>
    %85 = vector.shape_cast %84 : vector<1x8x128xf32> to vector<8x128xf32>
    %c5_26 = arith.constant 5 : index
    %86 = arith.index_cast %3 : i32 to index
    %c0_27 = arith.constant 0 : index
    %87 = vector.load %arg2[%c5_26, %86, %c0_27] : memref<10x8x128xf32, #tpu.memory_space<vmem>>, vector<1x8x128xf32>
    %88 = vector.shape_cast %87 : vector<1x8x128xf32> to vector<8x128xf32>
    %89 = arith.mulf %85, %85 : vector<8x128xf32>
    %90 = tpu.reciprocal %89 {approx = true} : vector<8x128xf32> -> vector<8x128xf32>
    %91 = arith.mulf %89, %90 : vector<8x128xf32>
    %cst_28 = arith.constant 2.000000e+00 : f32
    %92 = vector.broadcast %cst_28 : f32 to vector<8x128xf32>
    %93 = arith.subf %92, %91 : vector<8x128xf32>
    %94 = arith.mulf %90, %93 : vector<8x128xf32>
    %95 = arith.mulf %88, %94 : vector<8x128xf32>
    %cst_29 = arith.constant 5.000000e-01 : f32
    %96 = vector.broadcast %cst_29 : f32 to vector<8x128xf32>
    %97 = arith.mulf %96, %95 : vector<8x128xf32>
    %98 = arith.addf %42, %97 : vector<8x128xf32>
    %cst_30 = arith.constant 2.500000e-01 : f32
    %99 = vector.broadcast %cst_30 : f32 to vector<8x128xf32>
    %100 = arith.mulf %99, %94 : vector<8x128xf32>
    %101 = arith.addf %41, %100 : vector<8x128xf32>
    %cst_31 = arith.constant 2.500000e-01 : f32
    %102 = vector.broadcast %cst_31 : f32 to vector<8x128xf32>
    %103 = arith.mulf %102, %94 : vector<8x128xf32>
    %cst_32 = arith.constant 5.000000e-01 : f32
    %104 = vector.broadcast %cst_32 : f32 to vector<8x128xf32>
    %105 = arith.mulf %104, %95 : vector<8x128xf32>
    %106 = arith.addf %55, %105 : vector<8x128xf32>
    %cst_33 = arith.constant 2.500000e-01 : f32
    %107 = vector.broadcast %cst_33 : f32 to vector<8x128xf32>
    %108 = arith.mulf %107, %94 : vector<8x128xf32>
    %109 = arith.addf %54, %108 : vector<8x128xf32>
    %c6 = arith.constant 6 : index
    %110 = arith.index_cast %3 : i32 to index
    %c0_34 = arith.constant 0 : index
    %111 = vector.load %arg1[%c6, %110, %c0_34] : memref<10x8x128xf32, #tpu.memory_space<vmem>>, vector<1x8x128xf32>
    %112 = vector.shape_cast %111 : vector<1x8x128xf32> to vector<8x128xf32>
    %c6_35 = arith.constant 6 : index
    %113 = arith.index_cast %3 : i32 to index
    %c0_36 = arith.constant 0 : index
    %114 = vector.load %arg2[%c6_35, %113, %c0_36] : memref<10x8x128xf32, #tpu.memory_space<vmem>>, vector<1x8x128xf32>
    %115 = vector.shape_cast %114 : vector<1x8x128xf32> to vector<8x128xf32>
    %116 = arith.mulf %112, %112 : vector<8x128xf32>
    %117 = tpu.reciprocal %116 {approx = true} : vector<8x128xf32> -> vector<8x128xf32>
    %118 = arith.mulf %116, %117 : vector<8x128xf32>
    %cst_37 = arith.constant 2.000000e+00 : f32
    %119 = vector.broadcast %cst_37 : f32 to vector<8x128xf32>
    %120 = arith.subf %119, %118 : vector<8x128xf32>
    %121 = arith.mulf %117, %120 : vector<8x128xf32>
    %122 = arith.mulf %115, %121 : vector<8x128xf32>
    %cst_38 = arith.constant 2.500000e-01 : f32
    %123 = vector.broadcast %cst_38 : f32 to vector<8x128xf32>
    %124 = arith.mulf %123, %122 : vector<8x128xf32>
    %125 = arith.addf %71, %124 : vector<8x128xf32>
    %cst_39 = arith.constant 6.250000e-02 : f32
    %126 = vector.broadcast %cst_39 : f32 to vector<8x128xf32>
    %127 = arith.mulf %126, %121 : vector<8x128xf32>
    %128 = arith.addf %74, %127 : vector<8x128xf32>
    %cst_40 = arith.constant 6.250000e-02 : f32
    %129 = vector.broadcast %cst_40 : f32 to vector<8x128xf32>
    %130 = arith.mulf %129, %121 : vector<8x128xf32>
    %131 = arith.addf %76, %130 : vector<8x128xf32>
    %cst_41 = arith.constant 6.250000e-02 : f32
    %132 = vector.broadcast %cst_41 : f32 to vector<8x128xf32>
    %133 = arith.mulf %132, %121 : vector<8x128xf32>
    %cst_42 = arith.constant 6.250000e-02 : f32
    %134 = vector.broadcast %cst_42 : f32 to vector<8x128xf32>
    %135 = arith.mulf %134, %121 : vector<8x128xf32>
    %cst_43 = arith.constant 2.500000e-01 : f32
    %136 = vector.broadcast %cst_43 : f32 to vector<8x128xf32>
    %137 = arith.mulf %136, %122 : vector<8x128xf32>
    %138 = arith.addf %79, %137 : vector<8x128xf32>
    %cst_44 = arith.constant 6.250000e-02 : f32
    %139 = vector.broadcast %cst_44 : f32 to vector<8x128xf32>
    %140 = arith.mulf %139, %121 : vector<8x128xf32>
    %141 = arith.addf %82, %140 : vector<8x128xf32>
    %cst_45 = arith.constant 6.250000e-02 : f32
    %142 = vector.broadcast %cst_45 : f32 to vector<8x128xf32>
    %143 = arith.mulf %142, %121 : vector<8x128xf32>
    %cst_46 = arith.constant 6.250000e-02 : f32
    %144 = vector.broadcast %cst_46 : f32 to vector<8x128xf32>
    %145 = arith.mulf %144, %121 : vector<8x128xf32>
    %cst_47 = arith.constant 2.500000e-01 : f32
    %146 = vector.broadcast %cst_47 : f32 to vector<8x128xf32>
    %147 = arith.mulf %146, %122 : vector<8x128xf32>
    %148 = arith.addf %98, %147 : vector<8x128xf32>
    %cst_48 = arith.constant 6.250000e-02 : f32
    %149 = vector.broadcast %cst_48 : f32 to vector<8x128xf32>
    %150 = arith.mulf %149, %121 : vector<8x128xf32>
    %151 = arith.addf %101, %150 : vector<8x128xf32>
    %cst_49 = arith.constant 6.250000e-02 : f32
    %152 = vector.broadcast %cst_49 : f32 to vector<8x128xf32>
    %153 = arith.mulf %152, %121 : vector<8x128xf32>
    %154 = arith.addf %103, %153 : vector<8x128xf32>
    %cst_50 = arith.constant 2.500000e-01 : f32
    %155 = vector.broadcast %cst_50 : f32 to vector<8x128xf32>
    %156 = arith.mulf %155, %122 : vector<8x128xf32>
    %157 = arith.addf %106, %156 : vector<8x128xf32>
    %cst_51 = arith.constant 6.250000e-02 : f32
    %158 = vector.broadcast %cst_51 : f32 to vector<8x128xf32>
    %159 = arith.mulf %158, %121 : vector<8x128xf32>
    %160 = arith.addf %109, %159 : vector<8x128xf32>
    %c7 = arith.constant 7 : index
    %161 = arith.index_cast %3 : i32 to index
    %c0_52 = arith.constant 0 : index
    %162 = vector.load %arg1[%c7, %161, %c0_52] : memref<10x8x128xf32, #tpu.memory_space<vmem>>, vector<1x8x128xf32>
    %163 = vector.shape_cast %162 : vector<1x8x128xf32> to vector<8x128xf32>
    %c7_53 = arith.constant 7 : index
    %164 = arith.index_cast %3 : i32 to index
    %c0_54 = arith.constant 0 : index
    %165 = vector.load %arg2[%c7_53, %164, %c0_54] : memref<10x8x128xf32, #tpu.memory_space<vmem>>, vector<1x8x128xf32>
    %166 = vector.shape_cast %165 : vector<1x8x128xf32> to vector<8x128xf32>
    %167 = arith.mulf %163, %163 : vector<8x128xf32>
    %168 = tpu.reciprocal %167 {approx = true} : vector<8x128xf32> -> vector<8x128xf32>
    %169 = arith.mulf %167, %168 : vector<8x128xf32>
    %cst_55 = arith.constant 2.000000e+00 : f32
    %170 = vector.broadcast %cst_55 : f32 to vector<8x128xf32>
    %171 = arith.subf %170, %169 : vector<8x128xf32>
    %172 = arith.mulf %168, %171 : vector<8x128xf32>
    %173 = arith.mulf %166, %172 : vector<8x128xf32>
    %cst_56 = arith.constant 0.000000e+00 : f32
    %174 = vector.broadcast %cst_56 : f32 to vector<8x128xf32>
    %175 = arith.subf %174, %173 : vector<8x128xf32>
    %176 = arith.addf %125, %175 : vector<8x128xf32>
    %177 = arith.addf %128, %172 : vector<8x128xf32>
    %cst_57 = arith.constant 0.000000e+00 : f32
    %178 = vector.broadcast %cst_57 : f32 to vector<8x128xf32>
    %179 = arith.subf %178, %172 : vector<8x128xf32>
    %180 = arith.addf %131, %179 : vector<8x128xf32>
    %181 = arith.addf %138, %173 : vector<8x128xf32>
    %182 = arith.addf %141, %172 : vector<8x128xf32>
    %c8 = arith.constant 8 : index
    %183 = arith.index_cast %3 : i32 to index
    %c0_58 = arith.constant 0 : index
    %184 = vector.load %arg1[%c8, %183, %c0_58] : memref<10x8x128xf32, #tpu.memory_space<vmem>>, vector<1x8x128xf32>
    %185 = vector.shape_cast %184 : vector<1x8x128xf32> to vector<8x128xf32>
    %c8_59 = arith.constant 8 : index
    %186 = arith.index_cast %3 : i32 to index
    %c0_60 = arith.constant 0 : index
    %187 = vector.load %arg2[%c8_59, %186, %c0_60] : memref<10x8x128xf32, #tpu.memory_space<vmem>>, vector<1x8x128xf32>
    %188 = vector.shape_cast %187 : vector<1x8x128xf32> to vector<8x128xf32>
    %189 = arith.mulf %185, %185 : vector<8x128xf32>
    %190 = tpu.reciprocal %189 {approx = true} : vector<8x128xf32> -> vector<8x128xf32>
    %191 = arith.mulf %189, %190 : vector<8x128xf32>
    %cst_61 = arith.constant 2.000000e+00 : f32
    %192 = vector.broadcast %cst_61 : f32 to vector<8x128xf32>
    %193 = arith.subf %192, %191 : vector<8x128xf32>
    %194 = arith.mulf %190, %193 : vector<8x128xf32>
    %195 = arith.mulf %188, %194 : vector<8x128xf32>
    %cst_62 = arith.constant 0.000000e+00 : f32
    %196 = vector.broadcast %cst_62 : f32 to vector<8x128xf32>
    %197 = arith.subf %196, %195 : vector<8x128xf32>
    %198 = arith.addf %148, %197 : vector<8x128xf32>
    %199 = arith.addf %151, %194 : vector<8x128xf32>
    %cst_63 = arith.constant 0.000000e+00 : f32
    %200 = vector.broadcast %cst_63 : f32 to vector<8x128xf32>
    %201 = arith.subf %200, %194 : vector<8x128xf32>
    %202 = arith.addf %154, %201 : vector<8x128xf32>
    %203 = arith.addf %157, %195 : vector<8x128xf32>
    %204 = arith.addf %160, %194 : vector<8x128xf32>
    %c9 = arith.constant 9 : index
    %205 = arith.index_cast %3 : i32 to index
    %c0_64 = arith.constant 0 : index
    %206 = vector.load %arg1[%c9, %205, %c0_64] : memref<10x8x128xf32, #tpu.memory_space<vmem>>, vector<1x8x128xf32>
    %207 = vector.shape_cast %206 : vector<1x8x128xf32> to vector<8x128xf32>
    %c9_65 = arith.constant 9 : index
    %208 = arith.index_cast %3 : i32 to index
    %c0_66 = arith.constant 0 : index
    %209 = vector.load %arg2[%c9_65, %208, %c0_66] : memref<10x8x128xf32, #tpu.memory_space<vmem>>, vector<1x8x128xf32>
    %210 = vector.shape_cast %209 : vector<1x8x128xf32> to vector<8x128xf32>
    %211 = arith.mulf %207, %207 : vector<8x128xf32>
    %212 = tpu.reciprocal %211 {approx = true} : vector<8x128xf32> -> vector<8x128xf32>
    %213 = arith.mulf %211, %212 : vector<8x128xf32>
    %cst_67 = arith.constant 2.000000e+00 : f32
    %214 = vector.broadcast %cst_67 : f32 to vector<8x128xf32>
    %215 = arith.subf %214, %213 : vector<8x128xf32>
    %216 = arith.mulf %212, %215 : vector<8x128xf32>
    %217 = arith.mulf %210, %216 : vector<8x128xf32>
    %cst_68 = arith.constant -3.000000e-01 : f32
    %218 = vector.broadcast %cst_68 : f32 to vector<8x128xf32>
    %219 = arith.mulf %218, %217 : vector<8x128xf32>
    %220 = arith.addf %176, %219 : vector<8x128xf32>
    %cst_69 = arith.constant 9.000000e-02 : f32
    %221 = vector.broadcast %cst_69 : f32 to vector<8x128xf32>
    %222 = arith.mulf %221, %216 : vector<8x128xf32>
    %223 = arith.addf %177, %222 : vector<8x128xf32>
    %cst_70 = arith.constant 3.000000e-02 : f32
    %224 = vector.broadcast %cst_70 : f32 to vector<8x128xf32>
    %225 = arith.mulf %224, %216 : vector<8x128xf32>
    %226 = arith.addf %180, %225 : vector<8x128xf32>
    %cst_71 = arith.constant -3.000000e-02 : f32
    %227 = vector.broadcast %cst_71 : f32 to vector<8x128xf32>
    %228 = arith.mulf %227, %216 : vector<8x128xf32>
    %229 = arith.addf %133, %228 : vector<8x128xf32>
    %cst_72 = arith.constant -9.000000e-02 : f32
    %230 = vector.broadcast %cst_72 : f32 to vector<8x128xf32>
    %231 = arith.mulf %230, %216 : vector<8x128xf32>
    %232 = arith.addf %135, %231 : vector<8x128xf32>
    %cst_73 = arith.constant -1.000000e-01 : f32
    %233 = vector.broadcast %cst_73 : f32 to vector<8x128xf32>
    %234 = arith.mulf %233, %217 : vector<8x128xf32>
    %235 = arith.addf %181, %234 : vector<8x128xf32>
    %cst_74 = arith.constant 0.00999999977 : f32
    %236 = vector.broadcast %cst_74 : f32 to vector<8x128xf32>
    %237 = arith.mulf %236, %216 : vector<8x128xf32>
    %238 = arith.addf %182, %237 : vector<8x128xf32>
    %cst_75 = arith.constant -0.00999999977 : f32
    %239 = vector.broadcast %cst_75 : f32 to vector<8x128xf32>
    %240 = arith.mulf %239, %216 : vector<8x128xf32>
    %241 = arith.addf %143, %240 : vector<8x128xf32>
    %cst_76 = arith.constant -3.000000e-02 : f32
    %242 = vector.broadcast %cst_76 : f32 to vector<8x128xf32>
    %243 = arith.mulf %242, %216 : vector<8x128xf32>
    %244 = arith.addf %145, %243 : vector<8x128xf32>
    %cst_77 = arith.constant 1.000000e-01 : f32
    %245 = vector.broadcast %cst_77 : f32 to vector<8x128xf32>
    %246 = arith.mulf %245, %217 : vector<8x128xf32>
    %247 = arith.addf %198, %246 : vector<8x128xf32>
    %cst_78 = arith.constant 0.00999999977 : f32
    %248 = vector.broadcast %cst_78 : f32 to vector<8x128xf32>
    %249 = arith.mulf %248, %216 : vector<8x128xf32>
    %250 = arith.addf %199, %249 : vector<8x128xf32>
    %cst_79 = arith.constant 3.000000e-02 : f32
    %251 = vector.broadcast %cst_79 : f32 to vector<8x128xf32>
    %252 = arith.mulf %251, %216 : vector<8x128xf32>
    %253 = arith.addf %202, %252 : vector<8x128xf32>
    %cst_80 = arith.constant 3.000000e-01 : f32
    %254 = vector.broadcast %cst_80 : f32 to vector<8x128xf32>
    %255 = arith.mulf %254, %217 : vector<8x128xf32>
    %256 = arith.addf %203, %255 : vector<8x128xf32>
    %cst_81 = arith.constant 9.000000e-02 : f32
    %257 = vector.broadcast %cst_81 : f32 to vector<8x128xf32>
    %258 = arith.mulf %257, %216 : vector<8x128xf32>
    %259 = arith.addf %204, %258 : vector<8x128xf32>
    %260 = tpu.reciprocal %223 {approx = true} : vector<8x128xf32> -> vector<8x128xf32>
    %261 = arith.mulf %223, %260 : vector<8x128xf32>
    %cst_82 = arith.constant 2.000000e+00 : f32
    %262 = vector.broadcast %cst_82 : f32 to vector<8x128xf32>
    %263 = arith.subf %262, %261 : vector<8x128xf32>
    %264 = arith.mulf %260, %263 : vector<8x128xf32>
    %265 = arith.mulf %226, %264 : vector<8x128xf32>
    %266 = arith.mulf %265, %226 : vector<8x128xf32>
    %267 = arith.subf %238, %266 : vector<8x128xf32>
    %268 = arith.mulf %265, %229 : vector<8x128xf32>
    %269 = arith.subf %241, %268 : vector<8x128xf32>
    %270 = arith.mulf %265, %232 : vector<8x128xf32>
    %271 = arith.subf %244, %270 : vector<8x128xf32>
    %272 = arith.mulf %265, %220 : vector<8x128xf32>
    %273 = arith.subf %235, %272 : vector<8x128xf32>
    %274 = arith.mulf %229, %264 : vector<8x128xf32>
    %275 = arith.mulf %274, %229 : vector<8x128xf32>
    %276 = arith.subf %250, %275 : vector<8x128xf32>
    %277 = arith.mulf %274, %232 : vector<8x128xf32>
    %278 = arith.subf %253, %277 : vector<8x128xf32>
    %279 = arith.mulf %274, %220 : vector<8x128xf32>
    %280 = arith.subf %247, %279 : vector<8x128xf32>
    %281 = arith.mulf %232, %264 : vector<8x128xf32>
    %282 = arith.mulf %281, %232 : vector<8x128xf32>
    %283 = arith.subf %259, %282 : vector<8x128xf32>
    %284 = arith.mulf %281, %220 : vector<8x128xf32>
    %285 = arith.subf %256, %284 : vector<8x128xf32>
    %286 = tpu.reciprocal %267 {approx = true} : vector<8x128xf32> -> vector<8x128xf32>
    %287 = arith.mulf %267, %286 : vector<8x128xf32>
    %cst_83 = arith.constant 2.000000e+00 : f32
    %288 = vector.broadcast %cst_83 : f32 to vector<8x128xf32>
    %289 = arith.subf %288, %287 : vector<8x128xf32>
    %290 = arith.mulf %286, %289 : vector<8x128xf32>
    %291 = arith.mulf %269, %290 : vector<8x128xf32>
    %292 = arith.mulf %291, %269 : vector<8x128xf32>
    %293 = arith.subf %276, %292 : vector<8x128xf32>
    %294 = arith.mulf %291, %271 : vector<8x128xf32>
    %295 = arith.subf %278, %294 : vector<8x128xf32>
    %296 = arith.mulf %291, %273 : vector<8x128xf32>
    %297 = arith.subf %280, %296 : vector<8x128xf32>
    %298 = arith.mulf %271, %290 : vector<8x128xf32>
    %299 = arith.mulf %298, %271 : vector<8x128xf32>
    %300 = arith.subf %283, %299 : vector<8x128xf32>
    %301 = arith.mulf %298, %273 : vector<8x128xf32>
    %302 = arith.subf %285, %301 : vector<8x128xf32>
    %303 = tpu.reciprocal %293 {approx = true} : vector<8x128xf32> -> vector<8x128xf32>
    %304 = arith.mulf %293, %303 : vector<8x128xf32>
    %cst_84 = arith.constant 2.000000e+00 : f32
    %305 = vector.broadcast %cst_84 : f32 to vector<8x128xf32>
    %306 = arith.subf %305, %304 : vector<8x128xf32>
    %307 = arith.mulf %303, %306 : vector<8x128xf32>
    %308 = arith.mulf %295, %307 : vector<8x128xf32>
    %309 = arith.mulf %308, %295 : vector<8x128xf32>
    %310 = arith.subf %300, %309 : vector<8x128xf32>
    %311 = arith.mulf %308, %297 : vector<8x128xf32>
    %312 = arith.subf %302, %311 : vector<8x128xf32>
    %313 = tpu.reciprocal %310 {approx = true} : vector<8x128xf32> -> vector<8x128xf32>
    %314 = arith.mulf %310, %313 : vector<8x128xf32>
    %cst_85 = arith.constant 2.000000e+00 : f32
    %315 = vector.broadcast %cst_85 : f32 to vector<8x128xf32>
    %316 = arith.subf %315, %314 : vector<8x128xf32>
    %317 = arith.mulf %313, %316 : vector<8x128xf32>
    %318 = arith.mulf %312, %317 : vector<8x128xf32>
    %319 = arith.mulf %295, %318 : vector<8x128xf32>
    %320 = arith.subf %297, %319 : vector<8x128xf32>
    %321 = arith.mulf %320, %307 : vector<8x128xf32>
    %322 = arith.mulf %269, %321 : vector<8x128xf32>
    %323 = arith.subf %273, %322 : vector<8x128xf32>
    %324 = arith.mulf %271, %318 : vector<8x128xf32>
    %325 = arith.subf %323, %324 : vector<8x128xf32>
    %326 = arith.mulf %325, %290 : vector<8x128xf32>
    %327 = arith.mulf %226, %326 : vector<8x128xf32>
    %328 = arith.subf %220, %327 : vector<8x128xf32>
    %329 = arith.mulf %229, %321 : vector<8x128xf32>
    %330 = arith.subf %328, %329 : vector<8x128xf32>
    %331 = arith.mulf %232, %318 : vector<8x128xf32>
    %332 = arith.subf %330, %331 : vector<8x128xf32>
    %333 = arith.mulf %332, %264 : vector<8x128xf32>
    %c0_86 = arith.constant 0 : index
    %334 = arith.index_cast %3 : i32 to index
    %c0_87 = arith.constant 0 : index
    %335 = vector.load %arg3[%c0_86, %334, %c0_87] : memref<4x8x128xf32, #tpu.memory_space<vmem>>, vector<1x8x128xf32>
    %336 = vector.shape_cast %335 : vector<1x8x128xf32> to vector<8x128xf32>
    %337 = vector.shape_cast %333 : vector<8x128xf32> to vector<1x8x128xf32>
    tpu.vector_store %arg3[%c0_86, %334, %c0_87], %337 {strides = array<i32>} : memref<4x8x128xf32, #tpu.memory_space<vmem>>, vector<1x8x128xf32>,
    %c1_88 = arith.constant 1 : index
    %338 = arith.index_cast %3 : i32 to index
    %c0_89 = arith.constant 0 : index
    %339 = vector.load %arg3[%c1_88, %338, %c0_89] : memref<4x8x128xf32, #tpu.memory_space<vmem>>, vector<1x8x128xf32>
    %340 = vector.shape_cast %339 : vector<1x8x128xf32> to vector<8x128xf32>
    %341 = vector.shape_cast %326 : vector<8x128xf32> to vector<1x8x128xf32>
    tpu.vector_store %arg3[%c1_88, %338, %c0_89], %341 {strides = array<i32>} : memref<4x8x128xf32, #tpu.memory_space<vmem>>, vector<1x8x128xf32>,
    %c2_90 = arith.constant 2 : index
    %342 = arith.index_cast %3 : i32 to index
    %c0_91 = arith.constant 0 : index
    %343 = vector.load %arg3[%c2_90, %342, %c0_91] : memref<4x8x128xf32, #tpu.memory_space<vmem>>, vector<1x8x128xf32>
    %344 = vector.shape_cast %343 : vector<1x8x128xf32> to vector<8x128xf32>
    %345 = vector.shape_cast %321 : vector<8x128xf32> to vector<1x8x128xf32>
    tpu.vector_store %arg3[%c2_90, %342, %c0_91], %345 {strides = array<i32>} : memref<4x8x128xf32, #tpu.memory_space<vmem>>, vector<1x8x128xf32>,
    %c3_92 = arith.constant 3 : index
    %346 = arith.index_cast %3 : i32 to index
    %c0_93 = arith.constant 0 : index
    %347 = vector.load %arg3[%c3_92, %346, %c0_93] : memref<4x8x128xf32, #tpu.memory_space<vmem>>, vector<1x8x128xf32>
    %348 = vector.shape_cast %347 : vector<1x8x128xf32> to vector<8x128xf32>
    %349 = vector.shape_cast %318 : vector<8x128xf32> to vector<1x8x128xf32>
    tpu.vector_store %arg3[%c3_92, %346, %c0_93], %349 {strides = array<i32>} : memref<4x8x128xf32, #tpu.memory_space<vmem>>, vector<1x8x128xf32>,
    %c1_i32_94 = arith.constant 1 : i32
    return
  }
  func.func @transform_0(%arg0: i32) -> (i32, i32, i32) {
    %c0_i32 = arith.constant 0 : i32
    %c0_i32_0 = arith.constant 0 : i32
    %c0_i32_1 = arith.constant 0 : i32
    return %c0_i32, %arg0, %c0_i32_0 : i32, i32, i32
  }
  func.func @transform_1(%arg0: i32) -> (i32, i32, i32) {
    %c0_i32 = arith.constant 0 : i32
    %c0_i32_0 = arith.constant 0 : i32
    %c0_i32_1 = arith.constant 0 : i32
    return %c0_i32, %arg0, %c0_i32_0 : i32, i32, i32
  }
  func.func @transform_2(%arg0: i32) -> (i32, i32, i32) {
    %c0_i32 = arith.constant 0 : i32
    %c0_i32_0 = arith.constant 0 : i32
    %c0_i32_1 = arith.constant 0 : i32
    return %c0_i32, %arg0, %c0_i32_0 : i32, i32, i32
  }
}

</mosaic_0001>

<bundles_post_ra>
// kernel: tpu_custom_call.1
= control target key start
LH: loop header
LB: loop body
LE: loop exit
PB: predicated region body
PF: predicated region fallthrough
CT: control target
= control target key end

     0   :  { %7 = vsyncpa [#allocation3], 0  ;;  %s540_s0 = inlined_call_operand.hbm [shape: f32[10,8,128], index: 0, kind: input, shape index: {}]   ;;  %s541_s1 = inlined_call_operand.hbm [shape: f32[10,8,128], index: 1, kind: input, shape index: {}]   ;;  %s542_s2 = inlined_call_operand.hbm [shape: f32[4,8,128], index: 2, kind: output, shape index: {}]  }
   0x1   :  { %8 = vsyncpa [#allocation6], 0 }
   0x2   :  { %9 = vsyncpa [#allocation4], 0  ;;  %s423_s9 = smov [#allocation2]  }
   0x3   :  { %s15_s10 = sshll.u32 %s423_s9, 4  ;;  %s16_s10 = int_to_ptr.vmem [resolvable:$true] %s15_s10 }
   0x4   :  { %s365_s11 = scalar_lea.vmem %s16_s10, 1280  ;;  %p370_p1 = scmp.lt.s32.totalorder %s16_s10, %s16_s10 }
   0x5   :  { %p366_p0 = scmp.ne.s32.totalorder %s16_s10, %s365_s11  ;;  %p371_p2 = scmp.lt.s32.totalorder %s365_s11, %s365_s11 }
   0x7   :  { %p372_p3 = por %p371_p2, %p370_p1 }
   0x9   :  { %p373_p4 = pnand %p372_p3, %p366_p0 }
   0xb   :  { %376 = shalt.err (!%p373_p4)
}
   0xc   :  { %s424_s12 = smov 128   ;;  %s425_s13 = smov 8  }
   0xd   :  { %21 = dma.hbm_to_vmem [thread:$0]  %s540_s0, 1280, %s16_s10, [#allocation3], %s424_s12, %s424_s12, %s425_s13  }
   0xe   :  { %s426_s16 = smov [#allocation5]  }
   0xf   :  { %s27_s17 = sshll.u32 %s426_s16, 4  ;;  %s28_s17 = int_to_ptr.vmem [resolvable:$true] %s27_s17 }
  0x10   :  { %s385_s18 = scalar_lea.vmem %s28_s17, 1280  ;;  %p390_p6 = scmp.lt.s32.totalorder %s28_s17, %s28_s17 }
  0x11   :  { %p386_p5 = scmp.ne.s32.totalorder %s28_s17, %s385_s18  ;;  %p391_p7 = scmp.lt.s32.totalorder %s385_s18, %s385_s18 }
  0x13   :  { %p392_p8 = por %p391_p7, %p390_p6 }
  0x15   :  { %p393_p9 = pnand %p392_p8, %p386_p5 }
  0x17   :  { %396 = shalt.err (!%p393_p9)
}
  0x18   :  { %33 = dma.hbm_to_vmem [thread:$0]  %s541_s1, 1280, %s28_s17, [#allocation6], %s424_s12, %s424_s12, %s425_s13  }
  0x19   :  { %417 = dma.done.wait [#allocation3], 1280  }
  0x1a   :  { %418 = vsyncadd [#allocation3], 4294966016 }
  0x1b   :  { %419 = dma.done.wait [#allocation6], 1280  }
  0x1c   :  { %420 = vsyncadd [#allocation6], 4294966016  ;;  %v40_v0 = vld [vmem:[#allocation2] sm:$0xff]  ;;  %v50_v1 = vld [vmem:[#allocation2 + $0x8] sm:$0xff]  ;;  %s427_s0 = smov [#allocation7]  }
  0x1d   :  { %v42_v2 = vmul.f32 %v40_v0, %v40_v0  ;;  %v53_v3 = vmul.f32 %v50_v1, %v50_v1  ;;  %v61_v4 = vld [vmem:[#allocation2 + $0x10] sm:$0xff]  ;;  %v72_v6 = vld [vmem:[#allocation2 + $0x18] sm:$0xff]  ;;  %v83_v7 = vld [vmem:[#allocation2 + $0x20] sm:$0xff]  ;;  %s290_s1 = sshll.u32 %s427_s0, 4  ;;  %s291_s1 = int_to_ptr.vmem [resolvable:$true] %s290_s1 }
  0x1e   :  { %v64_v5 = vmul.f32 %v61_v4, %v61_v4  ;;  %v75_v8 = vmul.f32 %v72_v6, %v72_v6  ;;  %v86_v9 = vmul.f32 %v83_v7, %v83_v7  ;;  %v100_v10 = vld [vmem:[#allocation2 + $0x28] sm:$0xff]  ;;  %v117_v12 = vld [vmem:[#allocation2 + $0x30] sm:$0xff]  ;;  %v140_v13 = vld [vmem:[#allocation2 + $0x38] sm:$0xff]  ;;  %s397_s21 = scalar_lea.vmem %s291_s1, 512  ;;  %p402_p11 = scmp.lt.s32.totalorder %s291_s1, %s291_s1 }
  0x1f   :  { %329 = vrcp.f32 %v42_v2  ;;  %v103_v11 = vmul.f32 %v100_v10, %v100_v10  ;;  %v120_v14 = vmul.f32 %v117_v12, %v117_v12  ;;  %v158_v15 = vld [vmem:[#allocation2 + $0x40] sm:$0xff]  ;;  %v143_v16 = vmul.f32 %v140_v13, %v140_v13  ;;  %v176_v17 = vld [vmem:[#allocation2 + $0x48] sm:$0xff]  ;;  %v41_v34 = vld [vmem:[#allocation5] sm:$0xff]  ;;  %p398_p10 = scmp.ne.s32.totalorder %s291_s1, %s397_s21  ;;  %p403_p12 = scmp.lt.s32.totalorder %s397_s21, %s397_s21 }
  0x20   :  { %331 = vrcp.f32 %v53_v3  ;;  %v161_v18 = vmul.f32 %v158_v15, %v158_v15  ;;  %v179_v19 = vmul.f32 %v176_v17, %v176_v17  ;;  %v52_v39 = vld [vmem:[#allocation5 + $0x8] sm:$0xff]  ;;  %v85_v45 = vld [vmem:[#allocation5 + $0x20] sm:$0xff]  ;;  %v63_v50 = vld [vmem:[#allocation5 + $0x10] sm:$0xff] }
  0x21   :  { %333 = vrcp.f32 %v64_v5  ;;  %v102_v52 = vld [vmem:[#allocation5 + $0x28] sm:$0xff]  ;;  %v119_v57 = vld [vmem:[#allocation5 + $0x30] sm:$0xff]  ;;  %v74_v59 = vld [vmem:[#allocation5 + $0x18] sm:$0xff]  ;;  %p404_p13 = por %p403_p12, %p402_p11 }
  0x22   :  { %335 = vrcp.f32 %v75_v8 }
  0x23   :  { %337 = vrcp.f32 %v86_v9  ;;  %p405_p0 = pnand %p404_p13, %p398_p10 }
  0x24   :  { %339 = vrcp.f32 %v103_v11 }
  0x25   :  { %341 = vrcp.f32 %v120_v14 }
  0x26   :  { %343 = vrcp.f32 %v143_v16 }
  0x27   :  { %345 = vrcp.f32 %v161_v18 }
  0x28   :  { %347 = vrcp.f32 %v179_v19 }
  0x2c   :  { %v330_v20 = vpop.eup %329 }
  0x2d   :  { %v332_v21 = vpop.eup %331  ;;  %v44_v22 = vmul.f32 %v330_v20, %v42_v2  ;;  %v142_v2 = vld [vmem:[#allocation5 + $0x38] sm:$0xff] }
  0x2e   :  { %v334_v23 = vpop.eup %333  ;;  %v55_v24 = vmul.f32 %v332_v21, %v53_v3 }
  0x2f   :  { %v336_v25 = vpop.eup %335  ;;  %v45_v26 = vsub.f32 2.0, %v44_v22  ;;  %v66_v27 = vmul.f32 %v334_v23, %v64_v5 }
  0x30   :  { %v338_v28 = vpop.eup %337  ;;  %v56_v29 = vsub.f32 2.0, %v55_v24  ;;  %v77_v30 = vmul.f32 %v336_v25, %v75_v8 }
  0x31   :  { %v340_v31 = vpop.eup %339  ;;  %v88_v32 = vmul.f32 %v338_v28, %v86_v9  ;;  %v67_v35 = vsub.f32 2.0, %v66_v27  ;;  %v46_v38 = vmul.f32 %v330_v20, %v45_v26  ;;  %v160_v27 = vld [vmem:[#allocation5 + $0x40] sm:$0xff] }
  0x32   :  { %v342_v33 = vpop.eup %341  ;;  %v105_v36 = vmul.f32 %v340_v31, %v103_v11  ;;  %v78_v40 = vsub.f32 2.0, %v77_v30  ;;  %v455_v44 = vmul.f32 %v332_v21, %v56_v29  ;;  %v178_v29 = vld [vmem:[#allocation5 + $0x48] sm:$0xff] }
  0x33   :  { %v344_v37 = vpop.eup %343  ;;  %v89_v41 = vsub.f32 2.0, %v88_v32  ;;  %v122_v42 = vmul.f32 %v342_v33, %v120_v14  ;;  %v47_v49 = vmul.f32 %v46_v38, %v41_v34  ;;  %v458_v55 = vmul.f32 %v334_v23, %v67_v35 }
  0x34   :  { %v346_v43 = vpop.eup %345  ;;  %v106_v46 = vsub.f32 2.0, %v105_v36  ;;  %v145_v47 = vmul.f32 %v344_v37, %v143_v16  ;;  %v58_v54 = vmul.f32 %v455_v44, %v52_v39  ;;  %v79_v60 = vmul.f32 %v336_v25, %v78_v40 }
  0x35   :  { %v348_v48 = vpop.eup %347  ;;  %v90_v51 = vmul.f32 %v338_v28, %v89_v41  ;;  %v123_v53 = vsub.f32 2.0, %v122_v42  ;;  %v69_v0 = vmul.f32 %v458_v55, %v63_v50  ;;  %v163_v3 = vmul.f32 %v346_v43, %v161_v18 }
  0x36   :  { %v107_v56 = vmul.f32 %v340_v31, %v106_v46  ;;  %v146_v58 = vsub.f32 2.0, %v145_v47  ;;  %v181_v4 = vmul.f32 %v348_v48, %v179_v19  ;;  %v80_v9 = vmul.f32 %v79_v60, %v74_v59 }
  0x37   :  { %v91_v61 = vmul.f32 %v90_v51, %v85_v45  ;;  %v94_v62 = vmul.f32 0.25, %v90_v51  ;;  %v124_v63 = vmul.f32 %v342_v33, %v123_v53  ;;  %v164_v17 = vsub.f32 2.0, %v163_v3 }
  0x38   :  { %v108_v1 = vmul.f32 %v107_v56, %v102_v52  ;;  %v147_v8 = vmul.f32 %v344_v37, %v146_v58  ;;  %v461_v11 = vmul.f32 0.25, %v107_v56  ;;  %v182_v20 = vsub.f32 2.0, %v181_v4 }
  0x39   :  { %v92_v5 = vmul.f32 0.5, %v91_v61  ;;  %v95_v6 = vadd.f32 %v94_v62, %v46_v38  ;;  %v125_v7 = vmul.f32 %v124_v63, %v119_v57  ;;  %v463_v12 = vmul.f32 0.0625, %v124_v63 }
  0x3a   :  { %v109_v10 = vmul.f32 0.5, %v108_v1  ;;  %v148_v16 = vmul.f32 %v147_v8, %v142_v2  ;;  %v114_v21 = vadd.f32 %v461_v11, %v79_v60  ;;  %v467_v28 = vmul.f32 %v346_v43, %v164_v17 }
  0x3b   :  { %v93_v13 = vadd.f32 %v92_v5, %v47_v49  ;;  %v96_v14 = vadd.f32 %v92_v5, %v58_v54  ;;  %v126_v15 = vmul.f32 0.25, %v125_v7  ;;  %v129_v19 = vadd.f32 %v463_v12, %v95_v6 }
  0x3c   :  { %v110_v23 = vadd.f32 %v109_v10, %v69_v0  ;;  %v113_v24 = vadd.f32 %v109_v10, %v80_v9  ;;  %v149_v25 = vsub.f32 0.0, %v148_v16  ;;  %v469_v30 = vmul.f32 %v348_v48, %v182_v20 }
  0x3d   :  { %v127_v18 = vadd.f32 %v126_v15, %v93_v13  ;;  %v131_v22 = vadd.f32 %v126_v15, %v96_v14  ;;  %v137_v31 = vadd.f32 %v463_v12, %v114_v21  ;;  %v151_v33 = vadd.f32 %v147_v8, %v129_v19 }
  0x3e   :  { %v133_v34 = vadd.f32 %v126_v15, %v110_v23  ;;  %v136_v35 = vadd.f32 %v126_v15, %v113_v24  ;;  %v166_v36 = vmul.f32 %v467_v28, %v160_v27  ;;  %v184_v37 = vmul.f32 %v469_v30, %v178_v29 }
  0x3f   :  { %v154_v26 = vadd.f32 %v148_v16, %v131_v22  ;;  %v150_v32 = vadd.f32 %v149_v25, %v127_v18  ;;  %v187_v38 = vmul.f32 0.09, %v469_v30  ;;  %v193_v40 = vmul.f32 -0.09, %v469_v30 }
  0x40   :  { %v167_v39 = vsub.f32 0.0, %v166_v36  ;;  %v173_v41 = vadd.f32 %v467_v28, %v137_v31  ;;  %v185_v42 = vmul.f32 -0.3, %v184_v37  ;;  %v172_v46 = vadd.f32 %v166_v36, %v136_v35 }
  0x41   :  { %v188_v43 = vadd.f32 %v187_v38, %v151_v33  ;;  %v478_v47 = vadd.f32 %v193_v40, %v463_v12  ;;  %v195_v48 = vmul.f32 -0.1, %v184_v37  ;;  %v201_v50 = vmul.f32 0.1, %v184_v37 }
  0x42   :  { %v168_v45 = vadd.f32 %v167_v39, %v133_v34  ;;  %v480_v49 = vadd.f32 %v185_v42, %v150_v32  ;;  %v205_v52 = vmul.f32 0.3, %v184_v37  ;;  %v484_v54 = vadd.f32 %v187_v38, %v173_v41 }
  0x43   :  { %v196_v51 = vadd.f32 %v195_v48, %v154_v26  ;;  %349 = vrcp.f32 %v188_v43  ;;  %v97_v57 = vadd.f32 %v94_v62, %v455_v44  ;;  %v130_v58 = vadd.f32 %v463_v12, %v94_v62 }
  0x44   :  { %v482_v53 = vadd.f32 %v201_v50, %v168_v45  ;;  %v486_v56 = vadd.f32 %v205_v52, %v172_v46  ;;  %v152_v59 = vsub.f32 0.0, %v147_v8  ;;  %v189_v63 = vmul.f32 0.03, %v469_v30 }
  0x45   :  { %v132_v60 = vadd.f32 %v463_v12, %v97_v57  ;;  %v135_v1 = vadd.f32 %v463_v12, %v461_v11  ;;  %v170_v2 = vsub.f32 0.0, %v467_v28  ;;  %v191_v4 = vmul.f32 -0.03, %v469_v30 }
  0x46   :  { %v153_v61 = vadd.f32 %v152_v59, %v130_v58  ;;  %v197_v44 = vmul.f32 0.01, %v469_v30  ;;  %v112_v31 = vadd.f32 %v461_v11, %v458_v55  ;;  %v199_v33 = vmul.f32 -0.01, %v469_v30 }
  0x47   :  { %v155_v5 = vadd.f32 %v147_v8, %v132_v60  ;;  %v171_v7 = vadd.f32 %v170_v2, %v135_v1  ;;  %v502_v10 = vadd.f32 %v191_v4, %v463_v12 }
  0x48   :  { %v496_v6 = vadd.f32 %v189_v63, %v153_v61  ;;  %v134_v32 = vadd.f32 %v463_v12, %v112_v31  ;;  %v200_v35 = vadd.f32 %v199_v33, %v463_v12 }
  0x49   :  { %v198_v13 = vadd.f32 %v197_v44, %v155_v5  ;;  %v204_v16 = vadd.f32 %v189_v63, %v171_v7 }
  0x4a   :  { %v169_v34 = vadd.f32 %v467_v28, %v134_v32 }
  0x4c   :  { %v203_v40 = vadd.f32 %v197_v44, %v169_v34 }
  0x50   :  { %v350_v0 = vpop.eup %349 }
  0x51   :  { %v209_v3 = vmul.f32 %v350_v0, %v188_v43 }
  0x53   :  { %v210_v62 = vsub.f32 2.0, %v209_v3 }
  0x55   :  { %v499_v9 = vmul.f32 %v350_v0, %v210_v62 }
  0x57   :  { %v212_v14 = vmul.f32 %v499_v9, %v496_v6  ;;  %v228_v15 = vmul.f32 %v499_v9, %v478_v47  ;;  %v221_v8 = vmul.f32 %v499_v9, %v502_v10 }
  0x59   :  { %v213_v17 = vmul.f32 %v212_v14, %v496_v6  ;;  %v219_v20 = vmul.f32 %v212_v14, %v480_v49  ;;  %v224_v21 = vmul.f32 %v221_v8, %v478_v47  ;;  %v226_v18 = vmul.f32 %v221_v8, %v480_v49 }
  0x5a   :  { %v229_v19 = vmul.f32 %v228_v15, %v478_v47  ;;  %v231_v27 = vmul.f32 %v228_v15, %v480_v49  ;;  %v215_v36 = vmul.f32 %v212_v14, %v502_v10  ;;  %v217_v38 = vmul.f32 %v212_v14, %v478_v47 }
  0x5b   :  { %v214_v22 = vsub.f32 %v198_v13, %v213_v17  ;;  %v220_v23 = vsub.f32 %v196_v51, %v219_v20  ;;  %v225_v24 = vsub.f32 %v204_v16, %v224_v21  ;;  %v227_v25 = vsub.f32 %v482_v53, %v226_v18 }
  0x5c   :  { %v230_v26 = vsub.f32 %v484_v54, %v229_v19  ;;  %v232_v29 = vsub.f32 %v486_v56, %v231_v27  ;;  %v216_v41 = vsub.f32 %v200_v35, %v215_v36  ;;  %v222_v42 = vmul.f32 %v221_v8, %v502_v10 }
  0x5d   :  { %351 = vrcp.f32 %v214_v22  ;;  %v218_v55 = vsub.f32 %v502_v10, %v217_v38 }
  0x5e   :  { %v223_v45 = vsub.f32 %v203_v40, %v222_v42 }
  0x6a   :  { %v352_v37 = vpop.eup %351 }
  0x6b   :  { %v234_v39 = vmul.f32 %v352_v37, %v214_v22 }
  0x6d   :  { %v235_v43 = vsub.f32 2.0, %v234_v39 }
  0x6f   :  { %v236_v11 = vmul.f32 %v352_v37, %v235_v43 }
  0x71   :  { %v237_v30 = vmul.f32 %v236_v11, %v216_v41  ;;  %v244_v46 = vmul.f32 %v236_v11, %v218_v55 }
  0x73   :  { %v238_v28 = vmul.f32 %v237_v30, %v216_v41  ;;  %v240_v48 = vmul.f32 %v237_v30, %v218_v55  ;;  %v242_v12 = vmul.f32 %v237_v30, %v220_v23  ;;  %v245_v50 = vmul.f32 %v244_v46, %v218_v55 }
  0x74   :  { %v247_v51 = vmul.f32 %v244_v46, %v220_v23 }
  0x75   :  { %v239_v52 = vsub.f32 %v223_v45, %v238_v28  ;;  %v241_v53 = vsub.f32 %v225_v24, %v240_v48  ;;  %v243_v54 = vsub.f32 %v227_v25, %v242_v12  ;;  %v246_v56 = vsub.f32 %v230_v26, %v245_v50 }
  0x76   :  { %v248_v57 = vsub.f32 %v232_v29, %v247_v51 }
  0x77   :  { %353 = vrcp.f32 %v239_v52 }
  0x84   :  { %v354_v58 = vpop.eup %353 }
  0x85   :  { %v250_v59 = vmul.f32 %v354_v58, %v239_v52 }
  0x87   :  { %v251_v60 = vsub.f32 2.0, %v250_v59 }
  0x89   :  { %v252_v61 = vmul.f32 %v354_v58, %v251_v60 }
  0x8b   :  { %v253_v63 = vmul.f32 %v252_v61, %v241_v53 }
  0x8d   :  { %v254_v0 = vmul.f32 %v253_v63, %v241_v53  ;;  %v256_v1 = vmul.f32 %v253_v63, %v243_v54 }
  0x8f   :  { %v255_v2 = vsub.f32 %v246_v56, %v254_v0  ;;  %v257_v3 = vsub.f32 %v248_v57, %v256_v1 }
  0x91   :  { %355 = vrcp.f32 %v255_v2 }
  0x9e   :  { %v356_v4 = vpop.eup %355 }
  0x9f   :  { %v259_v5 = vmul.f32 %v356_v4, %v255_v2 }
  0xa1   :  { %v260_v44 = vsub.f32 2.0, %v259_v5 }
  0xa3   :  { %v261_v62 = vmul.f32 %v356_v4, %v260_v44 }
  0xa5   :  { %v262_v7 = vmul.f32 %v261_v62, %v257_v3 }
  0xa7   :  { %v263_v13 = vmul.f32 %v262_v7, %v241_v53  ;;  %v268_v14 = vmul.f32 %v262_v7, %v218_v55  ;;  %v275_v15 = vmul.f32 %v262_v7, %v478_v47  ;;  %284 = vst [vmem:[#allocation7 + $0x18] sm:$0xff] %v262_v7 }
  0xa9   :  { %v264_v16 = vsub.f32 %v243_v54, %v263_v13 }
  0xab   :  { %v265_v8 = vmul.f32 %v264_v16, %v252_v61 }
  0xad   :  { %v266_v17 = vmul.f32 %v265_v8, %v216_v41  ;;  %282 = vst [vmem:[#allocation7 + $0x10] sm:$0xff] %v265_v8  ;;  %v273_v22 = vmul.f32 %v265_v8, %v502_v10 }
  0xaf   :  { %v267_v20 = vsub.f32 %v220_v23, %v266_v17 }
  0xb1   :  { %v269_v21 = vsub.f32 %v267_v20, %v268_v14 }
  0xb3   :  { %v270_v18 = vmul.f32 %v269_v21, %v236_v11 }
  0xb5   :  { %v271_v19 = vmul.f32 %v270_v18, %v496_v6  ;;  %280 = vst [vmem:[#allocation7 + $0x8] sm:$0xff] %v270_v18 }
  0xb7   :  { %v272_v24 = vsub.f32 %v480_v49, %v271_v19 }
  0xb9   :  { %v274_v25 = vsub.f32 %v272_v24, %v273_v22 }
  0xbb   :  { %v276_v26 = vsub.f32 %v274_v25, %v275_v15 }
  0xbd   :  { %v277_v47 = vmul.f32 %v276_v26, %v499_v9 }
  0xbf   :  { %278 = vst [vmem:[#allocation7] sm:$0xff] %v277_v47 }
  0xc0   :  { %408 = shalt.err (!%p405_p0)
}
  0xc1   :  { %296 = dma.vmem_to_hbm [thread:$0]  %s291_s1, 512, %s542_s2, [#allocation4], %s424_s12, %s424_s12, %s425_s13  }
  0xc2   :  { %421 = dma.done.wait [#allocation4], 512  }
  0xc3   :  { %422 = vsyncadd [#allocation4], 4294966784 }
  0xc4   :  { %300 = vsyncpa [#allocation3], 1 }
  0xc5   :  { %301 = vsyncpa [#allocation6], 1 }
  0xc6   :  { %302 = vsyncpa [#allocation4], 1 }

</bundles_post_ra>
